<compile_context>
chip_gen: v5e
topology: v5e:2x2
jax: 0.10.0
libtpu: 0.0.40
codegen_flags: <defaults>
</compile_context>

<pallas_src>
import functools

import jax
import jax.numpy as jnp
import numpy as np
from jax.experimental import pallas as pl
from jax.experimental.pallas import tpu as pltpu


def _classifier_kernel(x_ref, wproj_ref, wfc_ref, bfc_ref, out_ref, *, B, N):
    # ---- frozen base_model stand-in: one fused projection over the whole flattened batch ----
    # x_ref:     (B*N, C+3) bf16     wproj_ref: (C+3, F) bf16
    h = jnp.dot(x_ref[...], wproj_ref[...],
                preferred_element_type=jnp.float32)            # (B*N, F) f32 MXU accumulate
    h = jnp.maximum(h, 0.0)                                    # ReLU in f32 (VPU)
    pooled = jnp.max(h.reshape(B, N, -1), axis=1)              # (B, F)  max-pool over points (XLU/VPU)

    # ---- fc1 : Linear(1280, 1) as VPU multiply + lane reduce (no lane-sparse MXU matmul) ----
    y = jnp.sum(pooled * wfc_ref[...], axis=-1, keepdims=True)  # (B, 1)
    out_ref[...] = y + bfc_ref[0]                               # scalar bias from SMEM


def binary_classifier_forward(xyz, features, w_xyz, w_feat, w_fc1, b_fc1):
    B, N, _ = xyz.shape
    C = features.shape[-1]
    F = w_fc1.shape[-1]  # torch Linear(1280, 1) weight is (1, 1280) -> kept lane-major

    # Fuse xyz/feature projections: single (B*N, C+3) input and stacked (C+3, F) weight.
    # bf16 MXU operands (halves weight DMA bytes); accumulation stays f32 inside the kernel.
    x_fused = (jnp.concatenate([xyz, features], axis=-1)
               .reshape(B * N, C + 3)
               .astype(jnp.bfloat16))
    w_proj = jnp.concatenate([w_xyz, w_feat], axis=0).astype(jnp.bfloat16)   # (C+3, F)
    w_fc_row = w_fc1.astype(jnp.float32)                                     # (1, F) lane-major
    b_fc = b_fc1.astype(jnp.float32)                                         # (1,)

    kernel = functools.partial(_classifier_kernel, B=B, N=N)

    return pl.pallas_call(
        kernel,
        out_shape=jax.ShapeDtypeStruct((B, 1), jnp.float32),
        in_specs=[
            pl.BlockSpec(memory_space=pltpu.MemorySpace.VMEM),   # fused points   (B*N, C+3) bf16
            pl.BlockSpec(memory_space=pltpu.MemorySpace.VMEM),   # fused proj W   (C+3, F)   bf16
            pl.BlockSpec(memory_space=pltpu.MemorySpace.VMEM),   # fc1 weight row (1, F)     f32
            pl.BlockSpec(memory_space=pltpu.MemorySpace.SMEM),   # fc1 bias       (1,) scalar
        ],
        out_specs=pl.BlockSpec(memory_space=pltpu.MemorySpace.VMEM),
    )(x_fused, w_proj, w_fc_row, b_fc)


def reference_forward(xyz, features, w_xyz, w_feat, w_fc1, b_fc1):
    # Matches the kernel's numerics: same bf16 cast of the fused projection operands,
    # f32 accumulation, f32 ReLU / max-pool / fc1.
    x = jnp.concatenate([xyz, features], axis=-1).astype(jnp.bfloat16)
    w = jnp.concatenate([w_xyz, w_feat], axis=0).astype(jnp.bfloat16)
    h = jnp.einsum("bnk,kf->bnf", x, w, preferred_element_type=jnp.float32)
    h = jnp.maximum(h, 0.0)
    pooled = jnp.max(h, axis=1)                      # (B, 1280)
    return pooled @ w_fc1.T + b_fc1                  # (B, 1)


if __name__ == "__main__":
    B, N, C, F = 2, 64, 32, 1280

    key = jax.random.PRNGKey(0)
    k_xyz, k_feat, k_wx, k_wf, k_wfc, k_bfc = jax.random.split(key, 6)

    xyz = jax.random.normal(k_xyz, (B, N, 3), dtype=jnp.float32)
    features = jax.random.normal(k_feat, (B, N, C), dtype=jnp.float32)

    # Deterministic parameter init (frozen base_model stand-in + fc1).
    w_xyz = jax.random.normal(k_wx, (3, F), dtype=jnp.float32) * 0.05
    w_feat = jax.random.normal(k_wf, (C, F), dtype=jnp.float32) * 0.05
    # torch.nn.Linear(1280, 1): weight (1, 1280) kept lane-major, bias (1,).
    w_fc1 = jax.random.normal(k_wfc, (1, F), dtype=jnp.float32) * (1.0 / np.sqrt(F))
    b_fc1 = jax.random.normal(k_bfc, (1,), dtype=jnp.float32) * (1.0 / np.sqrt(F))

    out = binary_classifier_forward(xyz, features, w_xyz, w_feat, w_fc1, b_fc1)
    out = jax.block_until_ready(out)

    ref = reference_forward(xyz, features, w_xyz, w_feat, w_fc1, b_fc1)
    np.testing.assert_allclose(np.asarray(out), np.asarray(ref), rtol=1e-4, atol=1e-4)

    print("KERNEL_OK")
</pallas_src>

<mosaic_0001>
module attributes {stable_mosaic.version = 11 : i64} {
  func.func @_classifier_kernel(%arg0: memref<128x35xbf16, #tpu.memory_space<vmem>>, %arg1: memref<35x1280xbf16, #tpu.memory_space<vmem>>, %arg2: memref<1x1280xf32, #tpu.memory_space<vmem>>, %arg3: memref<1xf32, #tpu.memory_space<smem>>, %arg4: memref<2x1xf32, #tpu.memory_space<vmem>>) attributes {dimension_semantics = [], scalar_prefetch = 0 : i64, scratch_operands = 0 : i64, tpu.core_type = #tpu.core_type<tc>} {
    %c0 = arith.constant 0 : index
    %c0_0 = arith.constant 0 : index
    %0 = vector.load %arg0[%c0, %c0_0] : memref<128x35xbf16, #tpu.memory_space<vmem>>, vector<128x35xbf16>
    %c0_1 = arith.constant 0 : index
    %c0_2 = arith.constant 0 : index
    %1 = vector.load %arg1[%c0_1, %c0_2] : memref<35x1280xbf16, #tpu.memory_space<vmem>>, vector<35x1280xbf16>
    %cst = arith.constant dense<0.000000e+00> : vector<128x1280xf32>
    %2 = tpu.matmul %0, %1, %cst {dimension_numbers = #tpu.dot_dimension_numbers<[1], [0], [0], [1], [0, 0, 1, 1], [], []>} : vector<128x35xbf16>, vector<35x1280xbf16>, vector<128x1280xf32> -> vector<128x1280xf32>
    %cst_3 = arith.constant 0.000000e+00 : f32
    %3 = vector.broadcast %cst_3 : f32 to vector<128x1280xf32>
    %4 = arith.maximumf %2, %3 : vector<128x1280xf32>
    %5 = vector.shape_cast %4 : vector<128x1280xf32> to vector<2x64x1280xf32>
    %cst_4 = arith.constant dense<0xFF800000> : vector<2x1280xf32>
    %6 = vector.multi_reduction <maximumf>, %5, %cst_4 [1] : vector<2x64x1280xf32> to vector<2x1280xf32>
    %c0_5 = arith.constant 0 : index
    %c0_6 = arith.constant 0 : index
    %7 = vector.load %arg2[%c0_5, %c0_6] : memref<1x1280xf32, #tpu.memory_space<vmem>>, vector<1x1280xf32>
    %8 = vector.broadcast %7 : vector<1x1280xf32> to vector<2x1280xf32>
    %9 = arith.mulf %6, %8 : vector<2x1280xf32>
    %cst_7 = arith.constant dense<0.000000e+00> : vector<2xf32>
    %10 = vector.multi_reduction <add>, %9, %cst_7 [1] : vector<2x1280xf32> to vector<2xf32>
    %11 = vector.shape_cast %10 : vector<2xf32> to vector<2x1xf32>
    %c0_8 = arith.constant 0 : index
    %12 = memref.load %arg3[%c0_8] : memref<1xf32, #tpu.memory_space<smem>>
    %13 = vector.broadcast %12 : f32 to vector<2x1xf32>
    %14 = arith.addf %11, %13 : vector<2x1xf32>
    %c0_9 = arith.constant 0 : index
    %c0_10 = arith.constant 0 : index
    %15 = vector.load %arg4[%c0_9, %c0_10] : memref<2x1xf32, #tpu.memory_space<vmem>>, vector<2x1xf32>
    tpu.vector_store %arg4[%c0_9, %c0_10], %14 {strides = array<i32>} : memref<2x1xf32, #tpu.memory_space<vmem>>, vector<2x1xf32>,
    return
  }
}

</mosaic_0001>

<bundles_post_ra>
// kernel: tpu_custom_call.1
= control target key start
LH: loop header
LB: loop body
LE: loop exit
PB: predicated region body
PF: predicated region fallthrough
CT: control target
= control target key end

     0   :  { %10 = vsyncpa [#allocation4], 0  ;;  %s1593_s18 = smov [#allocation3]   ;;  %s1594_s20 = smov 640   ;;  %s1922_s0 = inlined_call_operand.vmem [shape: bf16[128,35], index: 0, kind: input, shape index: {}]   ;;  %s1923_s1 = inlined_call_operand.hbm [shape: bf16[35,1280], index: 1, kind: input, shape index: {}]   ;;  %s1924_s2 = inlined_call_operand.vmem [shape: f32[1,1280], index: 2, kind: input, shape index: {}]   ;;  %s1925_s3 = inlined_call_operand.<no memory space> [shape: f32[1], index: 3, kind: input, shape index: {}]   ;;  %s1926_s4 = inlined_call_operand.vmem [shape: f32[2,1], index: 4, kind: output, shape index: {}]  }
   0x1   :  { %s17_s17 = sshll.u32 %s1923_s1, 4  ;;  %s19_s19 = sshll.u32 %s1593_s18, 4  ;;  %s18_s17 = int_to_ptr.hbm [resolvable:$true] %s17_s17  ;;  %s20_s19 = int_to_ptr.vmem [resolvable:$true] %s19_s19 }
   0x2   :  { %s1595_s21 = smov 40  }
   0x3   :  { %25 = dma.hbm_to_vmem [thread:$0]  %s18_s17, 3200, %s20_s19, [#allocation4], %s1594_s20, %s1594_s20, %s1595_s21  }
   0x4   :  { %1591 = dma.done.wait [#allocation4], 3200  }
   0x5   :  { %1592 = vsyncadd [#allocation4], 4294964096  ;;  %vm266_vm0 = vcmask 1040384   ;;  %vm267_vm1 = vcmask 1041408   ;;  %v1596_v0 = vmov 65535   ;;  %v1633_v32 = vld [vmem:[%s1922_s0] sm:$0xff] }
   0x6   :  { %v268_v1 = vsel %vm266_vm0, 4294967295, %v1596_v0  ;;  %v71_v2 = vld [vmem:[#allocation3 + $0xa0] sm:$0x33]  ;;  %v72_v8 = vld [vmem:[#allocation3 + $0xa8] sm:$0x33]  ;;  %vm241_vm2 = vcmask 285696  }
   0x7   :  { %v181_v3 = vunpack.c.l.b16 %v71_v2  ;;  %v182_v4 = vunpack.c.h.b16 %v71_v2  ;;  %v1626_v5 = vsel %vm267_vm1, %v268_v1, 0  ;;  %v1410_v9 = vld [vmem:[#allocation3 + $0x50] sm:$0xf]  ;;  %v1551_v10 = vld [vmem:[#allocation3 + $0x74] sm:$0xf0]  ;;  %v183_v15 = vunpack.c.l.b16 %v72_v8  ;;  %v1638_v33 = vld [vmem:[%s1922_s0 + $0x20] sm:$0xff] }
   0x8   :  { %v1546_v13 = vld [vmem:[#allocation3 + $0x54] sm:$0xf]  ;;  %v1412_v14 = vld [vmem:[#allocation3 + $0x78] sm:$0xf0]  ;;  %v184_v16 = vunpack.c.h.b16 %v72_v8  ;;  %v1411_v18 = vor.u32 %v1551_v10, %v1410_v9  ;;  %v1370_v20 = vld [vmem:[#allocation3] sm:$0xf] }
   0x9   :  { %v211_v6 = vpack.c.b16 %v181_v3, %v181_v3  ;;  %v212_v7 = vpack.c.b16 %v182_v4, %v182_v4  ;;  %v73_v17 = vld [vmem:[#allocation3 + $0xb0] sm:$0x33]  ;;  %v1415_v19 = vor.u32 %v1546_v13, %v1412_v14  ;;  %v1541_v21 = vld [vmem:[#allocation3 + $0x24] sm:$0xf0]  ;;  %v1536_v24 = vld [vmem:[#allocation3 + $0x4] sm:$0xf]  ;;  %v213_v26 = vpack.c.b16 %v183_v15, %v183_v15 }
   0xa   :  { %v185_v22 = vunpack.c.l.b16 %v73_v17  ;;  %v186_v23 = vunpack.c.h.b16 %v73_v17  ;;  %v1372_v25 = vld [vmem:[#allocation3 + $0x28] sm:$0xf0]  ;;  %v214_v27 = vpack.c.b16 %v184_v16, %v184_v16  ;;  %v1371_v28 = vor.u32 %v1541_v21, %v1370_v20  ;;  %v1418_v36 = vld [vmem:[#allocation3 + $0x58] sm:$0xf]  ;;  %v1552_v37 = vld [vmem:[#allocation3 + $0x7c] sm:$0xf0] }
   0xb   :  { %v271_v11 = vand.u32 %v1626_v5, %v211_v6  ;;  %v274_v12 = vand.u32 %v1626_v5, %v212_v7  ;;  %v1375_v29 = vor.u32 %v1536_v24, %v1372_v25  ;;  %v277_v34 = vand.u32 %v1626_v5, %v213_v26  ;;  %v1547_v38 = vld [vmem:[#allocation3 + $0x5c] sm:$0xf]  ;;  %v1420_v39 = vld [vmem:[#allocation3 + $0x80] sm:$0xf0]  ;;  %v1426_v44 = vld [vmem:[#allocation3 + $0x60] sm:$0xf] }
   0xc   :  { %v215_v30 = vpack.c.b16 %v185_v22, %v185_v22  ;;  %v216_v31 = vpack.c.b16 %v186_v23, %v186_v23  ;;  %v280_v35 = vand.u32 %v1626_v5, %v214_v27  ;;  %v1419_v42 = vor.u32 %v1552_v37, %v1418_v36  ;;  %v1553_v45 = vld [vmem:[#allocation3 + $0x84] sm:$0xf0]  ;;  %v1548_v46 = vld [vmem:[#allocation3 + $0x64] sm:$0xf]  ;;  %v1428_v48 = vld [vmem:[#allocation3 + $0x88] sm:$0xf0] }
   0xd   :  { %305 = vmatpush.bf16.msra.mxu0 %v271_v11  ;;  %1556 = vmatpush.bf16.msra.mxu2 %v271_v11  ;;  %v1423_v43 = vor.u32 %v1547_v38, %v1420_v39  ;;  %v1427_v47 = vor.u32 %v1553_v45, %v1426_v44  ;;  %v1378_v49 = vld [vmem:[#allocation3 + $0x8] sm:$0xf]  ;;  %v1542_v50 = vld [vmem:[#allocation3 + $0x2c] sm:$0xf0]  ;;  %v1431_v51 = vor.u32 %v1548_v46, %v1428_v48  ;;  %v1537_v53 = vld [vmem:[#allocation3 + $0xc] sm:$0xf] }
   0xe   :  { %354 = vmatpush.bf16.msra.mxu1 %v274_v12  ;;  %1559 = vmatpush.bf16.msra.mxu3 %v274_v12  ;;  %v283_v40 = vand.u32 %v1626_v5, %v215_v30  ;;  %v286_v41 = vand.u32 %v1626_v5, %v216_v31  ;;  %v1379_v52 = vor.u32 %v1542_v50, %v1378_v49  ;;  %v1380_v54 = vld [vmem:[#allocation3 + $0x30] sm:$0xf0]  ;;  %v1655_v56 = vld [vmem:[%s1922_s0 + $0x8] sm:$0xff]  ;;  %v1386_v58 = vld [vmem:[#allocation3 + $0x10] sm:$0xf]  ;;  %vm1275_vm3 = vcmask 1041409  }
   0xf   :  { %v1383_v55 = vor.u32 %v1537_v53, %v1380_v54  ;;  %v1660_v57 = vld [vmem:[%s1922_s0 + $0x28] sm:$0xff]  ;;  %v1543_v59 = vld [vmem:[#allocation3 + $0x34] sm:$0xf0]  ;;  %v1538_v60 = vld [vmem:[#allocation3 + $0x14] sm:$0xf]  ;;  %vm1329_vm4 = vcmask 1024  }
  0x10   :  { %v1387_v61 = vor.u32 %v1543_v59, %v1386_v58  ;;  %v1388_v62 = vld [vmem:[#allocation3 + $0x38] sm:$0xf0]  ;;  %v1673_v0 = vld [vmem:[%s1922_s0 + $0x10] sm:$0xff]  ;;  %v75_v3 = vld [vmem:[#allocation3 + $0xc0] sm:$0x33] }
  0x11   :  { %306 = vmatpush.bf16.msra.mxu0 %v1411_v18  ;;  %1557 = vmatpush.bf16.msra.mxu2 %v1411_v18  ;;  %v1391_v63 = vor.u32 %v1538_v60, %v1388_v62  ;;  %v1678_v1 = vld [vmem:[%s1922_s0 + $0x30] sm:$0xff]  ;;  %v74_v2 = vld [vmem:[#allocation3 + $0xb8] sm:$0x33]  ;;  %v189_v7 = vunpack.c.l.b16 %v75_v3  ;;  %v190_v8 = vunpack.c.h.b16 %v75_v3  ;;  %v1549_v20 = vld [vmem:[#allocation3 + $0x6c] sm:$0xf] }
  0x12   :  { %355 = vmatpush.bf16.msra.mxu1 %v1415_v19  ;;  %1560 = vmatpush.bf16.msra.mxu3 %v1415_v19  ;;  %v187_v4 = vunpack.c.l.b16 %v74_v2  ;;  %v188_v6 = vunpack.c.h.b16 %v74_v2  ;;  %v1695_v17 = vld [vmem:[%s1922_s0 + $0x18] sm:$0xff]  ;;  %v1554_v19 = vld [vmem:[#allocation3 + $0x8c] sm:$0xf0]  ;;  %v1436_v22 = vld [vmem:[#allocation3 + $0x90] sm:$0xf0] }
  0x13   :  { %v219_v11 = vpack.c.b16 %v189_v7, %v189_v7  ;;  %v220_v12 = vpack.c.b16 %v190_v8, %v190_v8  ;;  %v1700_v18 = vld [vmem:[%s1922_s0 + $0x38] sm:$0xff]  ;;  %v1439_v23 = vor.u32 %v1549_v20, %v1436_v22  ;;  %v1442_v24 = vld [vmem:[#allocation3 + $0x70] sm:$0xf]  ;;  %v1550_v26 = vld [vmem:[#allocation3 + $0x74] sm:$0xf] }
  0x14   :  { %v217_v9 = vpack.c.b16 %v187_v4, %v187_v4  ;;  %v218_v10 = vpack.c.b16 %v188_v6, %v188_v6  ;;  %v1555_v25 = vld [vmem:[#allocation3 + $0x94] sm:$0xf0]  ;;  %v1544_v31 = vld [vmem:[#allocation3 + $0x3c] sm:$0xf0]  ;;  %v1396_v36 = vld [vmem:[#allocation3 + $0x40] sm:$0xf0] }
  0x15   :  { %307 = vmatpush.bf16.msra.mxu0 %v1371_v28  ;;  %1558 = vmatpush.bf16.msra.mxu2 %v1371_v28  ;;  %v295_v15 = vand.u32 %v1626_v5, %v219_v11  ;;  %v298_v16 = vand.u32 %v1626_v5, %v220_v12  ;;  %v1443_v27 = vor.u32 %v1555_v25, %v1442_v24  ;;  %v1444_v28 = vld [vmem:[#allocation3 + $0x98] sm:$0xf0]  ;;  %v1394_v30 = vld [vmem:[#allocation3 + $0x18] sm:$0xf]  ;;  %v1404_v44 = vld [vmem:[#allocation3 + $0x48] sm:$0xf0] }
  0x16   :  { %356 = vmatpush.bf16.msra.mxu1 %v1375_v29  ;;  %1561 = vmatpush.bf16.msra.mxu3 %v1375_v29  ;;  %v289_v13 = vand.u32 %v1626_v5, %v217_v9  ;;  %v292_v14 = vand.u32 %v1626_v5, %v218_v10  ;;  %v1434_v5 = vld [vmem:[#allocation3 + $0x68] sm:$0xf]  ;;  %v1447_v29 = vor.u32 %v1550_v26, %v1444_v28 }
  0x17   :  { %v1435_v21 = vor.u32 %v1554_v19, %v1434_v5 }
  0x18   :  { %1448 = vmatmul.msk.bf16.vlgmr.msra.gmra.mxu0 %vm241_vm2, %v1633_v32  ;;  %1452 = vmatmul.msk.bf16.vlgmr.msra.gmra.mxu2 %vm241_vm2, %v1638_v33 }
  0x19   :  { %403 = vmatpush.bf16.msrb.mxu2 %v277_v34  ;;  %1456 = vmatmul.msk.bf16.vlgmr.msra.gmra.mxu1 %vm241_vm2, %v1633_v32  ;;  %v1539_v34 = vld [vmem:[#allocation3 + $0x1c] sm:$0xf] }
  0x1a   :  { %452 = vmatpush.bf16.msrb.mxu3 %v280_v35  ;;  %501 = vmatpush.bf16.msrb.mxu0 %v283_v40  ;;  %v1395_v35 = vor.u32 %v1544_v31, %v1394_v30  ;;  %v1399_v37 = vor.u32 %v1539_v34, %v1396_v36  ;;  %v1402_v40 = vld [vmem:[#allocation3 + $0x20] sm:$0xf] }
  0x1b   :  { %1460 = vmatmul.msk.bf16.vlgmr.msra.gmra.mxu3 %vm241_vm2, %v1638_v33  ;;  %550 = vmatpush.bf16.msrb.mxu1 %v286_v41  ;;  %v1545_v41 = vld [vmem:[#allocation3 + $0x44] sm:$0xf0] }
  0x1d   :  { %404 = vmatpush.bf16.msrb.mxu2 %v1419_v42  ;;  %v1540_v42 = vld [vmem:[#allocation3 + $0x24] sm:$0xf] }
  0x1e   :  { %453 = vmatpush.bf16.msrb.mxu3 %v1423_v43  ;;  %502 = vmatpush.bf16.msrb.mxu0 %v1427_v47  ;;  %v1403_v43 = vor.u32 %v1545_v41, %v1402_v40  ;;  %v1407_v46 = vor.u32 %v1540_v42, %v1404_v44 }
  0x1f   :  { %551 = vmatpush.bf16.msrb.mxu1 %v1431_v51 }
  0x21   :  { %405 = vmatpush.bf16.msrb.mxu2 %v1379_v52 }
  0x22   :  { %454 = vmatpush.bf16.msrb.mxu3 %v1383_v55  ;;  %503 = vmatpush.bf16.msrb.mxu0 %v1387_v61 }
  0x23   :  { %552 = vmatpush.bf16.msrb.mxu1 %v1391_v63 }
  0x25   :  { %599 = vmatpush.bf16.msra.mxu2 %v289_v13 }
  0x26   :  { %648 = vmatpush.bf16.msra.mxu3 %v292_v14  ;;  %697 = vmatpush.bf16.msra.mxu0 %v295_v15 }
  0x27   :  { %746 = vmatpush.bf16.msra.mxu1 %v298_v16 }
  0x28   :  { %1449 = vmatmul.msk.bf16.gmra.mxu0 %vm241_vm2, %v1655_v56  ;;  %1453 = vmatmul.msk.bf16.gmra.mxu2 %vm241_vm2, %v1660_v57 }
  0x29   :  { %1457 = vmatmul.msk.bf16.gmra.mxu1 %vm241_vm2, %v1655_v56  ;;  %600 = vmatpush.bf16.msra.mxu2 %v1435_v21 }
  0x2a   :  { %649 = vmatpush.bf16.msra.mxu3 %v1439_v23  ;;  %698 = vmatpush.bf16.msra.mxu0 %v1443_v27 }
  0x2b   :  { %1461 = vmatmul.msk.bf16.gmra.mxu3 %vm241_vm2, %v1660_v57  ;;  %747 = vmatpush.bf16.msra.mxu1 %v1447_v29 }
  0x2d   :  { %601 = vmatpush.bf16.msra.mxu2 %v1395_v35 }
  0x2e   :  { %650 = vmatpush.bf16.msra.mxu3 %v1399_v37  ;;  %699 = vmatpush.bf16.msra.mxu0 %v1403_v43 }
  0x2f   :  { %748 = vmatpush.bf16.msra.mxu1 %v1407_v46 }
  0x38   :  { %1450 = vmatmul.msk.bf16.gmra.mxu0 %vm241_vm2, %v1673_v0  ;;  %1454 = vmatmul.msk.bf16.gmra.mxu2 %vm241_vm2, %v1678_v1 }
  0x39   :  { %1458 = vmatmul.msk.bf16.gmra.mxu1 %vm241_vm2, %v1673_v0 }
  0x3b   :  { %1462 = vmatmul.msk.bf16.gmra.mxu3 %vm241_vm2, %v1678_v1 }
  0x48   :  { %1451 = vmatmul.msk.bf16.gmra.mxu0 %vm241_vm2, %v1695_v17  ;;  %1455 = vmatmul.msk.bf16.gmra.mxu2 %vm241_vm2, %v1700_v18 }
  0x49   :  { %1459 = vmatmul.msk.bf16.gmra.mxu1 %vm241_vm2, %v1695_v17 }
  0x4b   :  { %1463 = vmatmul.msk.bf16.gmra.mxu3 %vm241_vm2, %v1700_v18 }
  0x58   :  { %1464 = vmatmul.msk.bf16.vlgmr.msrb.gmra.mxu2 %vm241_vm2, %v1633_v32  ;;  %1480 = vmatmul.msk.bf16.vlgmr.msrb.gmra.mxu0 %vm241_vm2, %v1633_v32 }
  0x59   :  { %1488 = vmatmul.msk.bf16.vlgmr.msrb.gmra.mxu1 %vm241_vm2, %v1633_v32 }
  0x5b   :  { %1472 = vmatmul.msk.bf16.vlgmr.msrb.gmra.mxu3 %vm241_vm2, %v1633_v32 }
  0x68   :  { %1465 = vmatmul.msk.bf16.gmra.mxu2 %vm241_vm2, %v1655_v56  ;;  %1481 = vmatmul.msk.bf16.gmra.mxu0 %vm241_vm2, %v1655_v56 }
  0x69   :  { %1489 = vmatmul.msk.bf16.gmra.mxu1 %vm241_vm2, %v1655_v56 }
  0x6b   :  { %1473 = vmatmul.msk.bf16.gmra.mxu3 %vm241_vm2, %v1655_v56 }
  0x78   :  { %1466 = vmatmul.msk.bf16.gmra.mxu2 %vm241_vm2, %v1673_v0  ;;  %1482 = vmatmul.msk.bf16.gmra.mxu0 %vm241_vm2, %v1673_v0 }
  0x79   :  { %1490 = vmatmul.msk.bf16.gmra.mxu1 %vm241_vm2, %v1673_v0 }
  0x7b   :  { %1474 = vmatmul.msk.bf16.gmra.mxu3 %vm241_vm2, %v1673_v0 }
  0x88   :  { %1467 = vmatmul.msk.bf16.gmra.mxu2 %vm241_vm2, %v1695_v17  ;;  %1483 = vmatmul.msk.bf16.gmra.mxu0 %vm241_vm2, %v1695_v17 }
  0x89   :  { %1491 = vmatmul.msk.bf16.gmra.mxu1 %vm241_vm2, %v1695_v17 }
  0x8b   :  { %1475 = vmatmul.msk.bf16.gmra.mxu3 %vm241_vm2, %v1695_v17 }
  0x95   :  { %v309_v38 = vpop.f32.mrf.mxu0 }
  0x96   :  { %v358_v39 = vpop.f32.mrf.mxu1  ;;  %v790_v47 = vmax.f32 %v309_v38, 0.0 }
  0x97   :  { %v791_v49 = vmax.f32 %v358_v39, 0.0 }
  0x98   :  { %1468 = vmatmul.msk.bf16.gmra.mxu2 %vm241_vm2, %v1638_v33  ;;  %1484 = vmatmul.msk.bf16.gmra.mxu0 %vm241_vm2, %v1638_v33 }
  0x99   :  { %1492 = vmatmul.msk.bf16.gmra.mxu1 %vm241_vm2, %v1638_v33 }
  0x9b   :  { %1476 = vmatmul.msk.bf16.gmra.mxu3 %vm241_vm2, %v1638_v33  ;;  %v329_v45 = vpop.f32.mrf.mxu2 }
  0x9c   :  { %v870_v59 = vmax.f32 %v329_v45, 0.0 }
  0x9d   :  { %v311_v50 = vpop.f32.mrf.mxu0 }
  0x9e   :  { %v378_v48 = vpop.f32.mrf.mxu3  ;;  %v800_v51 = vmax.f32 %v311_v50, 0.0  ;;  %v360_v52 = vpop.f32.mrf.mxu1 }
  0x9f   :  { %v801_v53 = vmax.f32 %v360_v52, 0.0  ;;  %v871_v62 = vmax.f32 %v378_v48, 0.0 }
  0xa0   :  { %v950_v54 = vmax.f32 %v790_v47, %v800_v51 }
  0xa1   :  { %v963_v55 = vmax.f32 %v791_v49, %v801_v53 }
  0xa3   :  { %v331_v58 = vpop.f32.mrf.mxu2 }
  0xa4   :  { %v880_v60 = vmax.f32 %v331_v58, 0.0 }
  0xa5   :  { %v314_v2 = vpop.f32.mrf.mxu0 }
  0xa6   :  { %v380_v61 = vpop.f32.mrf.mxu3  ;;  %v1080_v3 = vmax.f32 %v870_v59, %v880_v60  ;;  %v810_v4 = vmax.f32 %v314_v2, 0.0  ;;  %v363_v6 = vpop.f32.mrf.mxu1 }
  0xa7   :  { %v881_v63 = vmax.f32 %v380_v61, 0.0  ;;  %v811_v8 = vmax.f32 %v363_v6, 0.0 }
  0xa8   :  { %v951_v9 = vmax.f32 %v950_v54, %v810_v4  ;;  %1469 = vmatmul.msk.bf16.gmra.mxu2 %vm241_vm2, %v1660_v57  ;;  %1485 = vmatmul.msk.bf16.gmra.mxu0 %vm241_vm2, %v1660_v57 }
  0xa9   :  { %v1093_v7 = vmax.f32 %v871_v62, %v881_v63  ;;  %v964_v10 = vmax.f32 %v963_v55, %v811_v8  ;;  %1493 = vmatmul.msk.bf16.gmra.mxu1 %vm241_vm2, %v1660_v57 }
  0xab   :  { %1477 = vmatmul.msk.bf16.gmra.mxu3 %vm241_vm2, %v1660_v57  ;;  %v334_v11 = vpop.f32.mrf.mxu2 }
  0xac   :  { %v890_v12 = vmax.f32 %v334_v11, 0.0 }
  0xad   :  { %v316_v15 = vpop.f32.mrf.mxu0 }
  0xae   :  { %v383_v13 = vpop.f32.mrf.mxu3  ;;  %v1081_v16 = vmax.f32 %v1080_v3, %v890_v12  ;;  %v820_v5 = vmax.f32 %v316_v15, 0.0  ;;  %v365_v19 = vpop.f32.mrf.mxu1 }
  0xaf   :  { %v891_v14 = vmax.f32 %v383_v13, 0.0  ;;  %v821_v21 = vmax.f32 %v365_v19, 0.0 }
  0xb0   :  { %v952_v22 = vmax.f32 %v951_v9, %v820_v5 }
  0xb1   :  { %v1094_v20 = vmax.f32 %v1093_v7, %v891_v14  ;;  %v965_v23 = vmax.f32 %v964_v10, %v821_v21 }
  0xb3   :  { %v336_v24 = vpop.f32.mrf.mxu2 }
  0xb4   :  { %v900_v25 = vmax.f32 %v336_v24, 0.0 }
  0xb5   :  { %v319_v28 = vpop.f32.mrf.mxu0 }
  0xb6   :  { %v385_v26 = vpop.f32.mrf.mxu3  ;;  %v1082_v29 = vmax.f32 %v1081_v16, %v900_v25  ;;  %v830_v30 = vmax.f32 %v319_v28, 0.0  ;;  %v368_v31 = vpop.f32.mrf.mxu1 }
  0xb7   :  { %v901_v27 = vmax.f32 %v385_v26, 0.0  ;;  %v831_v35 = vmax.f32 %v368_v31, 0.0 }
  0xb8   :  { %v953_v36 = vmax.f32 %v952_v22, %v830_v30  ;;  %1470 = vmatmul.msk.bf16.gmra.mxu2 %vm241_vm2, %v1678_v1  ;;  %1486 = vmatmul.msk.bf16.gmra.mxu0 %vm241_vm2, %v1678_v1 }
  0xb9   :  { %v1095_v34 = vmax.f32 %v1094_v20, %v901_v27  ;;  %v966_v37 = vmax.f32 %v965_v23, %v831_v35  ;;  %1494 = vmatmul.msk.bf16.gmra.mxu1 %vm241_vm2, %v1678_v1 }
  0xbb   :  { %1478 = vmatmul.msk.bf16.gmra.mxu3 %vm241_vm2, %v1678_v1  ;;  %v339_v38 = vpop.f32.mrf.mxu2 }
  0xbc   :  { %v910_v39 = vmax.f32 %v339_v38, 0.0 }
  0xbd   :  { %v321_v42 = vpop.f32.mrf.mxu0 }
  0xbe   :  { %v388_v40 = vpop.f32.mrf.mxu3  ;;  %v1083_v43 = vmax.f32 %v1082_v29, %v910_v39  ;;  %v840_v44 = vmax.f32 %v321_v42, 0.0  ;;  %v370_v45 = vpop.f32.mrf.mxu1 }
  0xbf   :  { %v911_v41 = vmax.f32 %v388_v40, 0.0  ;;  %v841_v47 = vmax.f32 %v370_v45, 0.0 }
  0xc0   :  { %v954_v48 = vmax.f32 %v953_v36, %v840_v44 }
  0xc1   :  { %v1096_v46 = vmax.f32 %v1095_v34, %v911_v41  ;;  %v967_v49 = vmax.f32 %v966_v37, %v841_v47 }
  0xc3   :  { %v341_v50 = vpop.f32.mrf.mxu2 }
  0xc4   :  { %v920_v51 = vmax.f32 %v341_v50, 0.0 }
  0xc5   :  { %v324_v54 = vpop.f32.mrf.mxu0 }
  0xc6   :  { %v390_v52 = vpop.f32.mrf.mxu3  ;;  %v1084_v55 = vmax.f32 %v1083_v43, %v920_v51  ;;  %v850_v58 = vmax.f32 %v324_v54, 0.0  ;;  %v373_v59 = vpop.f32.mrf.mxu1 }
  0xc7   :  { %v921_v53 = vmax.f32 %v390_v52, 0.0  ;;  %v851_v61 = vmax.f32 %v373_v59, 0.0 }
  0xc8   :  { %v955_v62 = vmax.f32 %v954_v48, %v850_v58  ;;  %1471 = vmatmul.msk.bf16.gmra.mxu2 %vm241_vm2, %v1700_v18  ;;  %1487 = vmatmul.msk.bf16.gmra.mxu0 %vm241_vm2, %v1700_v18 }
  0xc9   :  { %v1097_v60 = vmax.f32 %v1096_v46, %v921_v53  ;;  %v968_v63 = vmax.f32 %v967_v49, %v851_v61  ;;  %1495 = vmatmul.msk.bf16.gmra.mxu1 %vm241_vm2, %v1700_v18  ;;  %v1785_v49 = vld [vmem:[%s1924_s2] sm:$0xff] }
  0xca   :  { %v1214_v59 = vperm.slane %v1785_v49, 0 }
  0xcb   :  { %1479 = vmatmul.msk.bf16.gmra.mxu3 %vm241_vm2, %v1700_v18  ;;  %v344_v2 = vpop.f32.mrf.mxu2 }
  0xcc   :  { %v930_v3 = vmax.f32 %v344_v2, 0.0 }
  0xcd   :  { %v326_v7 = vpop.f32.mrf.mxu0 }
  0xce   :  { %v393_v4 = vpop.f32.mrf.mxu3  ;;  %v1085_v8 = vmax.f32 %v1084_v55, %v930_v3  ;;  %v860_v9 = vmax.f32 %v326_v7, 0.0  ;;  %v375_v10 = vpop.f32.mrf.mxu1 }
  0xcf   :  { %v931_v6 = vmax.f32 %v393_v4, 0.0  ;;  %v861_v12 = vmax.f32 %v375_v10, 0.0 }
  0xd0   :  { %v956_v13 = vmax.f32 %v955_v62, %v860_v9  ;;  %v1215_v62 = vperm.slane %v1785_v49, 1 }
  0xd1   :  { %v1098_v11 = vmax.f32 %v1097_v60, %v931_v6  ;;  %v969_v14 = vmax.f32 %v968_v63, %v861_v12 }
  0xd2   :  { %v957_v15 = vrot.slane %v956_v13, 4 }
  0xd3   :  { %v970_v16 = vrot.slane %v969_v14, 4  ;;  %v346_v5 = vpop.f32.mrf.mxu2 }
  0xd4   :  { %v958_v19 = vmax.f32 %v956_v13, %v957_v15  ;;  %v940_v20 = vmax.f32 %v346_v5, 0.0 }
  0xd5   :  { %v971_v22 = vmax.f32 %v969_v14, %v970_v16  ;;  %v505_v24 = vpop.f32.mrf.mxu0 }
  0xd6   :  { %v395_v21 = vpop.f32.mrf.mxu3  ;;  %v959_v25 = vrot.slane %v958_v19, 2  ;;  %v1086_v26 = vmax.f32 %v1085_v8, %v940_v20  ;;  %v554_v27 = vpop.f32.mrf.mxu1  ;;  %v794_v40 = vmax.f32 %v505_v24, 0.0 }
  0xd7   :  { %v941_v23 = vmax.f32 %v395_v21, 0.0  ;;  %v972_v28 = vrot.slane %v971_v22, 2  ;;  %v795_v43 = vmax.f32 %v554_v27, 0.0 }
  0xd8   :  { %v1087_v30 = vrot.slane %v1086_v26, 4  ;;  %1496 = vmatmul.msk.bf16.vlgmr.msra.gmra.mxu2 %vm241_vm2, %v1633_v32  ;;  %1512 = vmatmul.msk.bf16.vlgmr.msra.gmra.mxu0 %vm241_vm2, %v1633_v32  ;;  %v960_v34 = vmax.f32 %v958_v19, %v959_v25 }
  0xd9   :  { %v1099_v29 = vmax.f32 %v1098_v11, %v941_v23  ;;  %1520 = vmatmul.msk.bf16.vlgmr.msra.gmra.mxu1 %vm241_vm2, %v1633_v32  ;;  %v973_v36 = vmax.f32 %v971_v22, %v972_v28 }
  0xda   :  { %v1088_v35 = vmax.f32 %v1086_v26, %v1087_v30  ;;  %v961_v45 = vrot.slane %v960_v34, 1 }
  0xdb   :  { %v1100_v31 = vrot.slane %v1099_v29, 4  ;;  %1504 = vmatmul.msk.bf16.vlgmr.msra.gmra.mxu3 %vm241_vm2, %v1633_v32  ;;  %v407_v38 = vpop.f32.mrf.mxu2  ;;  %v974_v32 = vrot.slane %v973_v36, 1 }
  0xdc   :  { %v1089_v39 = vrot.slane %v1088_v35, 2  ;;  %v962_v58 = vmax.f32 %v960_v34, %v961_v45  ;;  %v792_v4 = vmax.f32 %v407_v38, 0.0 }
  0xdd   :  { %v1101_v37 = vmax.f32 %v1099_v29, %v1100_v31  ;;  %v507_v44 = vpop.f32.mrf.mxu0  ;;  %v975_v61 = vmax.f32 %v973_v36, %v974_v32 }
  0xde   :  { %v456_v41 = vpop.f32.mrf.mxu3  ;;  %v1090_v46 = vmax.f32 %v1088_v35, %v1089_v39  ;;  %v804_v47 = vmax.f32 %v507_v44, 0.0  ;;  %v556_v48 = vpop.f32.mrf.mxu1  ;;  %v1234_v12 = vmul.f32 %v1214_v59, %v962_v58 }
  0xdf   :  { %v1102_v42 = vrot.slane %v1101_v37, 2  ;;  %v805_v51 = vmax.f32 %v556_v48, 0.0  ;;  %v793_v9 = vmax.f32 %v456_v41, 0.0  ;;  %v1235_v5 = vmul.f32 %v1215_v62, %v975_v61 }
  0xe0   :  { %v1091_v52 = vrot.slane %v1090_v46, 1  ;;  %v1002_v53 = vmax.f32 %v794_v40, %v804_v47 }
  0xe1   :  { %v1103_v50 = vmax.f32 %v1101_v37, %v1102_v42  ;;  %v1015_v55 = vmax.f32 %v795_v43, %v805_v51 }
  0xe2   :  { %v1092_v60 = vmax.f32 %v1090_v46, %v1091_v52 }
  0xe3   :  { %v1104_v54 = vrot.slane %v1103_v50, 1  ;;  %v409_v2 = vpop.f32.mrf.mxu2 }
  0xe4   :  { %v1244_v3 = vmul.f32 %v1214_v59, %v1092_v60  ;;  %v802_v6 = vmax.f32 %v409_v2, 0.0 }
  0xe5   :  { %v1105_v63 = vmax.f32 %v1103_v50, %v1104_v54  ;;  %v510_v11 = vpop.f32.mrf.mxu0 }
  0xe6   :  { %v458_v7 = vpop.f32.mrf.mxu3  ;;  %v1274_v13 = vrot.slane %v1244_v3, 7  ;;  %v976_v14 = vmax.f32 %v792_v4, %v802_v6  ;;  %v814_v15 = vmax.f32 %v510_v11, 0.0  ;;  %v559_v16 = vpop.f32.mrf.mxu1 }
  0xe7   :  { %v1245_v8 = vmul.f32 %v1215_v62, %v1105_v63  ;;  %v803_v10 = vmax.f32 %v458_v7, 0.0  ;;  %v815_v21 = vmax.f32 %v559_v16, 0.0 }
  0xe8   :  { %v1276_v22 = vsel %vm1275_vm3, %v1274_v13, %v1234_v12  ;;  %v1003_v23 = vmax.f32 %v1002_v53, %v814_v15  ;;  %1497 = vmatmul.msk.bf16.gmra.mxu2 %vm241_vm2, %v1655_v56  ;;  %1513 = vmatmul.msk.bf16.gmra.mxu0 %vm241_vm2, %v1655_v56 }
  0xe9   :  { %v1277_v19 = vrot.slane %v1245_v8, 7  ;;  %v989_v20 = vmax.f32 %v793_v9, %v803_v10  ;;  %v1016_v25 = vmax.f32 %v1015_v55, %v815_v21  ;;  %1521 = vmatmul.msk.bf16.gmra.mxu1 %vm241_vm2, %v1655_v56  ;;  %v1305_v26 = vsel %vm267_vm1, %v1276_v22, 0.0 }
  0xeb   :  { %v1278_v24 = vsel %vm1275_vm3, %v1277_v19, %v1235_v5  ;;  %1505 = vmatmul.msk.bf16.gmra.mxu3 %vm241_vm2, %v1655_v56  ;;  %v412_v28 = vpop.f32.mrf.mxu2 }
  0xec   :  { %v1306_v27 = vsel %vm267_vm1, %v1278_v24, 0.0  ;;  %v812_v30 = vmax.f32 %v412_v28, 0.0 }
  0xed   :  { %v1801_v29 = vadd.f32 %v1306_v27, %v1305_v26  ;;  %v512_v35 = vpop.f32.mrf.mxu0 }
  0xee   :  { %v461_v31 = vpop.f32.mrf.mxu3  ;;  %v977_v36 = vmax.f32 %v976_v14, %v812_v30  ;;  %v824_v37 = vmax.f32 %v512_v35, 0.0  ;;  %v561_v38 = vpop.f32.mrf.mxu1 }
  0xef   :  { %v813_v34 = vmax.f32 %v461_v31, 0.0  ;;  %v825_v40 = vmax.f32 %v561_v38, 0.0 }
  0xf0   :  { %v1004_v41 = vmax.f32 %v1003_v23, %v824_v37 }
  0xf1   :  { %v990_v39 = vmax.f32 %v989_v20, %v813_v34  ;;  %v1017_v42 = vmax.f32 %v1016_v25, %v825_v40 }
  0xf3   :  { %v414_v43 = vpop.f32.mrf.mxu2 }
  0xf4   :  { %v822_v56 = vmax.f32 %v414_v43, 0.0 }
  0xf5   :  { %v515_v46 = vpop.f32.mrf.mxu0 }
  0xf6   :  { %v463_v44 = vpop.f32.mrf.mxu3  ;;  %v978_v47 = vmax.f32 %v977_v36, %v822_v56  ;;  %v834_v48 = vmax.f32 %v515_v46, 0.0  ;;  %v564_v32 = vpop.f32.mrf.mxu1 }
  0xf7   :  { %v823_v45 = vmax.f32 %v463_v44, 0.0  ;;  %v835_v51 = vmax.f32 %v564_v32, 0.0 }
  0xf8   :  { %v1005_v52 = vmax.f32 %v1004_v41, %v834_v48  ;;  %1498 = vmatmul.msk.bf16.gmra.mxu2 %vm241_vm2, %v1673_v0  ;;  %1514 = vmatmul.msk.bf16.gmra.mxu0 %vm241_vm2, %v1673_v0 }
  0xf9   :  { %v991_v50 = vmax.f32 %v990_v39, %v823_v45  ;;  %v1018_v53 = vmax.f32 %v1017_v42, %v835_v51  ;;  %1522 = vmatmul.msk.bf16.gmra.mxu1 %vm241_vm2, %v1673_v0 }
  0xfb   :  { %1506 = vmatmul.msk.bf16.gmra.mxu3 %vm241_vm2, %v1673_v0  ;;  %v417_v54 = vpop.f32.mrf.mxu2 }
  0xfc   :  { %v832_v55 = vmax.f32 %v417_v54, 0.0 }
  0xfd   :  { %v517_v60 = vpop.f32.mrf.mxu0 }
  0xfe   :  { %v466_v58 = vpop.f32.mrf.mxu3  ;;  %v979_v61 = vmax.f32 %v978_v47, %v832_v55  ;;  %v844_v62 = vmax.f32 %v517_v60, 0.0  ;;  %v566_v63 = vpop.f32.mrf.mxu1 }
  0xff   :  { %v833_v59 = vmax.f32 %v466_v58, 0.0  ;;  %v845_v3 = vmax.f32 %v566_v63, 0.0 }
 0x100   :  { %v1006_v4 = vmax.f32 %v1005_v52, %v844_v62 }
 0x101   :  { %v992_v2 = vmax.f32 %v991_v50, %v833_v59  ;;  %v1019_v6 = vmax.f32 %v1018_v53, %v845_v3 }
 0x103   :  { %v419_v7 = vpop.f32.mrf.mxu2 }
 0x104   :  { %v842_v8 = vmax.f32 %v419_v7, 0.0 }
 0x105   :  { %v520_v11 = vpop.f32.mrf.mxu0 }
 0x106   :  { %v468_v9 = vpop.f32.mrf.mxu3  ;;  %v980_v12 = vmax.f32 %v979_v61, %v842_v8  ;;  %v854_v13 = vmax.f32 %v520_v11, 0.0  ;;  %v569_v0 = vpop.f32.mrf.mxu1 }
 0x107   :  { %v843_v10 = vmax.f32 %v468_v9, 0.0  ;;  %v855_v15 = vmax.f32 %v569_v0, 0.0 }
 0x108   :  { %v1007_v16 = vmax.f32 %v1006_v4, %v854_v13  ;;  %1499 = vmatmul.msk.bf16.gmra.mxu2 %vm241_vm2, %v1695_v17  ;;  %1515 = vmatmul.msk.bf16.gmra.mxu0 %vm241_vm2, %v1695_v17 }
 0x109   :  { %v993_v14 = vmax.f32 %v992_v2, %v843_v10  ;;  %v1020_v5 = vmax.f32 %v1019_v6, %v855_v15  ;;  %1523 = vmatmul.msk.bf16.gmra.mxu1 %vm241_vm2, %v1695_v17 }
 0x10b   :  { %1507 = vmatmul.msk.bf16.gmra.mxu3 %vm241_vm2, %v1695_v17  ;;  %v422_v19 = vpop.f32.mrf.mxu2 }
 0x10c   :  { %v852_v20 = vmax.f32 %v422_v19, 0.0 }
 0x10d   :  { %v522_v23 = vpop.f32.mrf.mxu0 }
 0x10e   :  { %v471_v21 = vpop.f32.mrf.mxu3  ;;  %v981_v24 = vmax.f32 %v980_v12, %v852_v20  ;;  %v864_v25 = vmax.f32 %v522_v23, 0.0  ;;  %v571_v26 = vpop.f32.mrf.mxu1 }
 0x10f   :  { %v853_v22 = vmax.f32 %v471_v21, 0.0  ;;  %v865_v28 = vmax.f32 %v571_v26, 0.0 }
 0x110   :  { %v1819_v30 = vmax.f32 %v1007_v16, %v864_v25 }
 0x111   :  { %v994_v27 = vmax.f32 %v993_v14, %v853_v22  ;;  %v1821_v31 = vmax.f32 %v1020_v5, %v865_v28 }
 0x113   :  { %v424_v34 = vpop.f32.mrf.mxu2 }
 0x114   :  { %v862_v35 = vmax.f32 %v424_v34, 0.0 }
 0x115   :  { %v525_v38 = vpop.f32.mrf.mxu0 }
 0x116   :  { %v473_v36 = vpop.f32.mrf.mxu3  ;;  %v1823_v17 = vmax.f32 %v981_v24, %v862_v35  ;;  %v574_v39 = vpop.f32.mrf.mxu1  ;;  %v874_v42 = vmax.f32 %v525_v38, 0.0 }
 0x117   :  { %v863_v37 = vmax.f32 %v473_v36, 0.0  ;;  %v875_v56 = vmax.f32 %v574_v39, 0.0 }
 0x118   :  { %1500 = vmatmul.msk.bf16.gmra.mxu2 %vm241_vm2, %v1638_v33  ;;  %1516 = vmatmul.msk.bf16.gmra.mxu0 %vm241_vm2, %v1638_v33 }
 0x119   :  { %v1825_v40 = vmax.f32 %v994_v27, %v863_v37  ;;  %1524 = vmatmul.msk.bf16.gmra.mxu1 %vm241_vm2, %v1638_v33 }
 0x11b   :  { %1508 = vmatmul.msk.bf16.gmra.mxu3 %vm241_vm2, %v1638_v33  ;;  %v427_v41 = vpop.f32.mrf.mxu2 }
 0x11c   :  { %v872_v51 = vmax.f32 %v427_v41, 0.0 }
 0x11d   :  { %v527_v44 = vpop.f32.mrf.mxu0 }
 0x11e   :  { %v476_v43 = vpop.f32.mrf.mxu3  ;;  %v884_v45 = vmax.f32 %v527_v44, 0.0  ;;  %v576_v46 = vpop.f32.mrf.mxu1 }
 0x11f   :  { %v885_v47 = vmax.f32 %v576_v46, 0.0  ;;  %v873_v54 = vmax.f32 %v476_v43, 0.0 }
 0x120   :  { %v1132_v48 = vmax.f32 %v874_v42, %v884_v45 }
 0x121   :  { %v1145_v32 = vmax.f32 %v875_v56, %v885_v47 }
 0x123   :  { %v429_v50 = vpop.f32.mrf.mxu2 }
 0x124   :  { %v882_v52 = vmax.f32 %v429_v50, 0.0 }
 0x125   :  { %v530_v58 = vpop.f32.mrf.mxu0 }
 0x126   :  { %v478_v53 = vpop.f32.mrf.mxu3  ;;  %v1106_v59 = vmax.f32 %v872_v51, %v882_v52  ;;  %v894_v60 = vmax.f32 %v530_v58, 0.0  ;;  %v579_v33 = vpop.f32.mrf.mxu1 }
 0x127   :  { %v883_v55 = vmax.f32 %v478_v53, 0.0  ;;  %v895_v62 = vmax.f32 %v579_v33, 0.0  ;;  %v1009_v53 = vrot.slane %v1819_v30, 4 }
 0x128   :  { %v1133_v63 = vmax.f32 %v1132_v48, %v894_v60  ;;  %1501 = vmatmul.msk.bf16.gmra.mxu2 %vm241_vm2, %v1660_v57  ;;  %1517 = vmatmul.msk.bf16.gmra.mxu0 %vm241_vm2, %v1660_v57 }
 0x129   :  { %v1119_v61 = vmax.f32 %v873_v54, %v883_v55  ;;  %v1146_v2 = vmax.f32 %v1145_v32, %v895_v62  ;;  %1525 = vmatmul.msk.bf16.gmra.mxu1 %vm241_vm2, %v1660_v57  ;;  %v1022_v55 = vrot.slane %v1821_v31, 4  ;;  %v1010_v60 = vmax.f32 %v1819_v30, %v1009_v53 }
 0x12b   :  { %1509 = vmatmul.msk.bf16.gmra.mxu3 %vm241_vm2, %v1660_v57  ;;  %v432_v3 = vpop.f32.mrf.mxu2  ;;  %v1023_v62 = vmax.f32 %v1821_v31, %v1022_v55 }
 0x12c   :  { %v892_v4 = vmax.f32 %v432_v3, 0.0  ;;  %v983_v3 = vrot.slane %v1823_v17, 4 }
 0x12d   :  { %v532_v8 = vpop.f32.mrf.mxu0 }
 0x12e   :  { %v481_v6 = vpop.f32.mrf.mxu3  ;;  %v1107_v9 = vmax.f32 %v1106_v59, %v892_v4  ;;  %v904_v10 = vmax.f32 %v532_v8, 0.0  ;;  %v581_v11 = vpop.f32.mrf.mxu1  ;;  %v996_v8 = vrot.slane %v1825_v40, 4  ;;  %v984_v30 = vmax.f32 %v1823_v17, %v983_v3 }
 0x12f   :  { %v893_v7 = vmax.f32 %v481_v6, 0.0  ;;  %v905_v13 = vmax.f32 %v581_v11, 0.0  ;;  %v1011_v11 = vrot.slane %v1010_v60, 2 }
 0x130   :  { %v1134_v0 = vmax.f32 %v1133_v63, %v904_v10  ;;  %v997_v31 = vmax.f32 %v1825_v40, %v996_v8 }
 0x131   :  { %v1120_v12 = vmax.f32 %v1119_v61, %v893_v7  ;;  %v1147_v14 = vmax.f32 %v1146_v2, %v905_v13 }
 0x133   :  { %v434_v15 = vpop.f32.mrf.mxu2 }
 0x134   :  { %v902_v16 = vmax.f32 %v434_v15, 0.0 }
 0x135   :  { %v535_v20 = vpop.f32.mrf.mxu0 }
 0x136   :  { %v483_v5 = vpop.f32.mrf.mxu3  ;;  %v1108_v21 = vmax.f32 %v1107_v9, %v902_v16  ;;  %v914_v22 = vmax.f32 %v535_v20, 0.0  ;;  %v584_v57 = vpop.f32.mrf.mxu1  ;;  %v1012_v16 = vmax.f32 %v1010_v60, %v1011_v11 }
 0x137   :  { %v903_v19 = vmax.f32 %v483_v5, 0.0  ;;  %v915_v24 = vmax.f32 %v584_v57, 0.0 }
 0x138   :  { %v1135_v25 = vmax.f32 %v1134_v0, %v914_v22  ;;  %1502 = vmatmul.msk.bf16.gmra.mxu2 %vm241_vm2, %v1678_v1  ;;  %1518 = vmatmul.msk.bf16.gmra.mxu0 %vm241_vm2, %v1678_v1 }
 0x139   :  { %v1121_v23 = vmax.f32 %v1120_v12, %v903_v19  ;;  %v1148_v26 = vmax.f32 %v1147_v14, %v915_v24  ;;  %1526 = vmatmul.msk.bf16.gmra.mxu1 %vm241_vm2, %v1678_v1  ;;  %v1024_v12 = vrot.slane %v1023_v62, 2  ;;  %v985_v24 = vrot.slane %v984_v30, 2 }
 0x13b   :  { %1510 = vmatmul.msk.bf16.gmra.mxu3 %vm241_vm2, %v1678_v1  ;;  %v437_v27 = vpop.f32.mrf.mxu2 }
 0x13c   :  { %v912_v28 = vmax.f32 %v437_v27, 0.0 }
 0x13d   :  { %v537_v36 = vpop.f32.mrf.mxu0 }
 0x13e   :  { %v486_v34 = vpop.f32.mrf.mxu3  ;;  %v1109_v37 = vmax.f32 %v1108_v21, %v912_v28  ;;  %v924_v38 = vmax.f32 %v537_v36, 0.0  ;;  %v586_v39 = vpop.f32.mrf.mxu1  ;;  %v1025_v21 = vmax.f32 %v1023_v62, %v1024_v12  ;;  %v998_v28 = vrot.slane %v997_v31, 2 }
 0x13f   :  { %v913_v35 = vmax.f32 %v486_v34, 0.0  ;;  %v925_v42 = vmax.f32 %v586_v39, 0.0 }
 0x140   :  { %v1136_v43 = vmax.f32 %v1135_v25, %v924_v38 }
 0x141   :  { %v1122_v41 = vmax.f32 %v1121_v23, %v913_v35  ;;  %v1149_v56 = vmax.f32 %v1148_v26, %v925_v42  ;;  %v1013_v35 = vrot.slane %v1012_v16, 1  ;;  %v986_v42 = vmax.f32 %v984_v30, %v985_v24 }
 0x143   :  { %v439_v44 = vpop.f32.mrf.mxu2  ;;  %v987_v60 = vrot.slane %v986_v42, 1 }
 0x144   :  { %v922_v45 = vmax.f32 %v439_v44, 0.0  ;;  %v1219_v44 = vperm.slane %v1785_v49, 5 }
 0x145   :  { %v540_v48 = vpop.f32.mrf.mxu0  ;;  %v988_v30 = vmax.f32 %v986_v42, %v987_v60 }
 0x146   :  { %v488_v46 = vpop.f32.mrf.mxu3  ;;  %v1110_v32 = vmax.f32 %v1109_v37, %v922_v45  ;;  %v934_v50 = vmax.f32 %v540_v48, 0.0  ;;  %v589_v1 = vpop.f32.mrf.mxu1  ;;  %v1026_v37 = vrot.slane %v1025_v21, 1  ;;  %v999_v45 = vmax.f32 %v997_v31, %v998_v28 }
 0x147   :  { %v923_v47 = vmax.f32 %v488_v46, 0.0  ;;  %v935_v52 = vmax.f32 %v589_v1, 0.0 }
 0x148   :  { %v1137_v54 = vmax.f32 %v1136_v43, %v934_v50  ;;  %1503 = vmatmul.msk.bf16.gmra.mxu2 %vm241_vm2, %v1700_v18  ;;  %1519 = vmatmul.msk.bf16.gmra.mxu0 %vm241_vm2, %v1700_v18  ;;  %v1027_v53 = vmax.f32 %v1025_v21, %v1026_v37 }
 0x149   :  { %v1123_v51 = vmax.f32 %v1122_v41, %v923_v47  ;;  %v1150_v58 = vmax.f32 %v1149_v56, %v935_v52  ;;  %1527 = vmatmul.msk.bf16.gmra.mxu1 %vm241_vm2, %v1700_v18  ;;  %v1218_v41 = vperm.slane %v1785_v49, 4 }
 0x14a   :  { %v1239_v11 = vmul.f32 %v1219_v44, %v1027_v53 }
 0x14b   :  { %1511 = vmatmul.msk.bf16.gmra.mxu3 %vm241_vm2, %v1700_v18  ;;  %v442_v59 = vpop.f32.mrf.mxu2 }
 0x14c   :  { %v932_v33 = vmax.f32 %v442_v59, 0.0 }
 0x14d   :  { %v542_v2 = vpop.f32.mrf.mxu0 }
 0x14e   :  { %v491_v61 = vpop.f32.mrf.mxu3  ;;  %v1111_v4 = vmax.f32 %v1110_v32, %v932_v33  ;;  %v944_v6 = vmax.f32 %v542_v2, 0.0  ;;  %v591_v7 = vpop.f32.mrf.mxu1  ;;  %v1014_v32 = vmax.f32 %v1012_v16, %v1013_v35  ;;  %v1000_v2 = vrot.slane %v999_v45, 1 }
 0x14f   :  { %v933_v63 = vmax.f32 %v491_v61, 0.0  ;;  %v945_v10 = vmax.f32 %v591_v7, 0.0  ;;  %v1217_v16 = vperm.slane %v1785_v49, 3 }
 0x150   :  { %v1138_v18 = vmax.f32 %v1137_v54, %v944_v6  ;;  %v1238_v7 = vmul.f32 %v1218_v41, %v1014_v32 }
 0x151   :  { %v1124_v9 = vmax.f32 %v1123_v51, %v933_v63  ;;  %v1151_v13 = vmax.f32 %v1150_v58, %v945_v10 }
 0x152   :  { %v1139_v0 = vrot.slane %v1138_v18, 4 }
 0x153   :  { %v1152_v14 = vrot.slane %v1151_v13, 4  ;;  %v444_v15 = vpop.f32.mrf.mxu2 }
 0x154   :  { %v1140_v5 = vmax.f32 %v1138_v18, %v1139_v0  ;;  %v942_v19 = vmax.f32 %v444_v15, 0.0  ;;  %v1216_v0 = vperm.slane %v1785_v49, 2  ;;  %v1001_v15 = vmax.f32 %v999_v45, %v1000_v2 }
 0x155   :  { %v1153_v22 = vmax.f32 %v1151_v13, %v1152_v14  ;;  %v701_v23 = vpop.f32.mrf.mxu0 }
 0x156   :  { %v493_v20 = vpop.f32.mrf.mxu3  ;;  %v1141_v25 = vrot.slane %v1140_v5, 2  ;;  %v1112_v26 = vmax.f32 %v1111_v4, %v942_v19  ;;  %v750_v27 = vpop.f32.mrf.mxu1  ;;  %v798_v51 = vmax.f32 %v701_v23, 0.0  ;;  %v1236_v28 = vmul.f32 %v1216_v0, %v988_v30 }
 0x157   :  { %v943_v57 = vmax.f32 %v493_v20, 0.0  ;;  %v1154_v34 = vrot.slane %v1153_v22, 2  ;;  %v799_v58 = vmax.f32 %v750_v27, 0.0 }
 0x158   :  { %v1142_v36 = vmax.f32 %v1140_v5, %v1141_v25  ;;  %v1113_v40 = vrot.slane %v1112_v26, 4 }
 0x159   :  { %v1125_v17 = vmax.f32 %v1124_v9, %v943_v57  ;;  %v1155_v38 = vmax.f32 %v1153_v22, %v1154_v34 }
 0x15a   :  { %v1143_v43 = vrot.slane %v1142_v36, 1  ;;  %v1114_v56 = vmax.f32 %v1112_v26, %v1113_v40  ;;  %v1237_v40 = vmul.f32 %v1217_v16, %v1001_v15 }
 0x15b   :  { %v1126_v39 = vrot.slane %v1125_v17, 4  ;;  %v1156_v46 = vrot.slane %v1155_v38, 1  ;;  %v603_v48 = vpop.f32.mrf.mxu2 }
 0x15c   :  { %v1144_v50 = vmax.f32 %v1142_v36, %v1143_v43  ;;  %v1115_v1 = vrot.slane %v1114_v56, 2  ;;  %v796_v22 = vmax.f32 %v603_v48, 0.0 }
 0x15d   :  { %v1127_v47 = vmax.f32 %v1125_v17, %v1126_v39  ;;  %v1157_v54 = vmax.f32 %v1155_v38, %v1156_v46  ;;  %v703_v59 = vpop.f32.mrf.mxu0 }
 0x15e   :  { %v652_v52 = vpop.f32.mrf.mxu3  ;;  %v1248_v33 = vmul.f32 %v1218_v41, %v1144_v50  ;;  %v1116_v61 = vmax.f32 %v1114_v56, %v1115_v1  ;;  %v808_v62 = vmax.f32 %v703_v59, 0.0  ;;  %v752_v63 = vpop.f32.mrf.mxu1 }
 0x15f   :  { %v1128_v55 = vrot.slane %v1127_v47, 2  ;;  %v1249_v3 = vmul.f32 %v1219_v44, %v1157_v54  ;;  %v809_v6 = vmax.f32 %v752_v63, 0.0  ;;  %v797_v25 = vmax.f32 %v652_v52, 0.0 }
 0x160   :  { %v1283_v8 = vrot.slane %v1248_v33, 7  ;;  %v1117_v9 = vrot.slane %v1116_v61, 1  ;;  %v1054_v10 = vmax.f32 %v798_v51, %v808_v62 }
 0x161   :  { %v1129_v4 = vmax.f32 %v1127_v47, %v1128_v55  ;;  %v1285_v18 = vrot.slane %v1249_v3, 7  ;;  %v1067_v13 = vmax.f32 %v799_v58, %v809_v6 }
 0x162   :  { %v1118_v31 = vmax.f32 %v1116_v61, %v1117_v9  ;;  %v1284_v14 = vsel %vm1275_vm3, %v1283_v8, %v1238_v7 }
 0x163   :  { %v1130_v12 = vrot.slane %v1129_v4, 1  ;;  %v605_v19 = vpop.f32.mrf.mxu2  ;;  %v1286_v20 = vsel %vm1275_vm3, %v1285_v18, %v1239_v11  ;;  %v1312_v51 = vsel %vm267_vm1, %v1284_v14, 0.0 }
 0x164   :  { %v1246_v21 = vmul.f32 %v1216_v0, %v1118_v31  ;;  %v806_v57 = vmax.f32 %v605_v19, 0.0  ;;  %v1314_v60 = vsel %vm267_vm1, %v1286_v20, 0.0 }
 0x165   :  { %v1131_v5 = vmax.f32 %v1129_v4, %v1130_v12  ;;  %v706_v27 = vpop.f32.mrf.mxu0 }
 0x166   :  { %v654_v23 = vpop.f32.mrf.mxu3  ;;  %v1279_v34 = vrot.slane %v1246_v21, 7  ;;  %v1028_v17 = vmax.f32 %v796_v22, %v806_v57  ;;  %v818_v35 = vmax.f32 %v706_v27, 0.0  ;;  %v755_v36 = vpop.f32.mrf.mxu1 }
 0x167   :  { %v1247_v24 = vmul.f32 %v1217_v16, %v1131_v5  ;;  %v807_v26 = vmax.f32 %v654_v23, 0.0  ;;  %v819_v38 = vmax.f32 %v755_v36, 0.0 }
 0x168   :  { %v1280_v39 = vsel %vm1275_vm3, %v1279_v34, %v1236_v28  ;;  %v1055_v41 = vmax.f32 %v1054_v10, %v818_v35 }
 0x169   :  { %v1281_v37 = vrot.slane %v1247_v24, 7  ;;  %v1041_v49 = vmax.f32 %v797_v25, %v807_v26  ;;  %v1068_v42 = vmax.f32 %v1067_v13, %v819_v38  ;;  %v1308_v56 = vsel %vm267_vm1, %v1280_v39, 0.0 }
 0x16a   :  { %v1309_v44 = vadd.f32 %v1308_v56, %v1801_v29 }
 0x16b   :  { %v1282_v43 = vsel %vm1275_vm3, %v1281_v37, %v1237_v40  ;;  %v608_v45 = vpop.f32.mrf.mxu2 }
 0x16c   :  { %v1310_v46 = vsel %vm267_vm1, %v1282_v43, 0.0  ;;  %v816_v47 = vmax.f32 %v608_v45, 0.0 }
 0x16d   :  { %v1311_v32 = vadd.f32 %v1310_v46, %v1309_v44  ;;  %v708_v1 = vpop.f32.mrf.mxu0 }
 0x16e   :  { %v657_v48 = vpop.f32.mrf.mxu3  ;;  %v1029_v52 = vmax.f32 %v1028_v17, %v816_v47  ;;  %v828_v53 = vmax.f32 %v708_v1, 0.0  ;;  %v757_v54 = vpop.f32.mrf.mxu1 }
 0x16f   :  { %v817_v50 = vmax.f32 %v657_v48, 0.0  ;;  %v1313_v55 = vadd.f32 %v1312_v51, %v1311_v32  ;;  %v829_v59 = vmax.f32 %v757_v54, 0.0 }
 0x170   :  { %v1056_v33 = vmax.f32 %v1055_v41, %v828_v53 }
 0x171   :  { %v1042_v58 = vmax.f32 %v1041_v49, %v817_v50  ;;  %v1880_v29 = vadd.f32 %v1314_v60, %v1313_v55  ;;  %v1069_v61 = vmax.f32 %v1068_v42, %v829_v59 }
 0x173   :  { %v610_v62 = vpop.f32.mrf.mxu2 }
 0x174   :  { %v826_v63 = vmax.f32 %v610_v62, 0.0 }
 0x175   :  { %v711_v4 = vpop.f32.mrf.mxu0 }
 0x176   :  { %v659_v2 = vpop.f32.mrf.mxu3  ;;  %v1030_v6 = vmax.f32 %v1029_v52, %v826_v63  ;;  %v838_v7 = vmax.f32 %v711_v4, 0.0  ;;  %v760_v8 = vpop.f32.mrf.mxu1 }
 0x177   :  { %v827_v3 = vmax.f32 %v659_v2, 0.0  ;;  %v839_v10 = vmax.f32 %v760_v8, 0.0 }
 0x178   :  { %v1057_v11 = vmax.f32 %v1056_v33, %v838_v7 }
 0x179   :  { %v1043_v9 = vmax.f32 %v1042_v58, %v827_v3  ;;  %v1070_v18 = vmax.f32 %v1069_v61, %v839_v10 }
 0x17b   :  { %v613_v12 = vpop.f32.mrf.mxu2 }
 0x17c   :  { %v836_v13 = vmax.f32 %v613_v12, 0.0 }
 0x17d   :  { %v713_v31 = vpop.f32.mrf.mxu0 }
 0x17e   :  { %v662_v30 = vpop.f32.mrf.mxu3  ;;  %v1031_v14 = vmax.f32 %v1030_v6, %v836_v13  ;;  %v848_v15 = vmax.f32 %v713_v31, 0.0  ;;  %v762_v16 = vpop.f32.mrf.mxu1 }
 0x17f   :  { %v837_v0 = vmax.f32 %v662_v30, 0.0  ;;  %v849_v19 = vmax.f32 %v762_v16, 0.0 }
 0x180   :  { %v1058_v20 = vmax.f32 %v1057_v11, %v848_v15 }
 0x181   :  { %v1044_v5 = vmax.f32 %v1043_v9, %v837_v0  ;;  %v1071_v21 = vmax.f32 %v1070_v18, %v849_v19 }
 0x183   :  { %v615_v22 = vpop.f32.mrf.mxu2 }
 0x184   :  { %v846_v57 = vmax.f32 %v615_v22, 0.0 }
 0x185   :  { %v716_v25 = vpop.f32.mrf.mxu0 }
 0x186   :  { %v664_v23 = vpop.f32.mrf.mxu3  ;;  %v1032_v26 = vmax.f32 %v1031_v14, %v846_v57  ;;  %v858_v27 = vmax.f32 %v716_v25, 0.0  ;;  %v765_v28 = vpop.f32.mrf.mxu1 }
 0x187   :  { %v847_v24 = vmax.f32 %v664_v23, 0.0  ;;  %v859_v17 = vmax.f32 %v765_v28, 0.0 }
 0x188   :  { %v1059_v35 = vmax.f32 %v1058_v20, %v858_v27 }
 0x189   :  { %v1045_v34 = vmax.f32 %v1044_v5, %v847_v24  ;;  %v1072_v36 = vmax.f32 %v1071_v21, %v859_v17 }
 0x18b   :  { %v618_v40 = vpop.f32.mrf.mxu2 }
 0x18c   :  { %v856_v37 = vmax.f32 %v618_v40, 0.0 }
 0x18d   :  { %v718_v39 = vpop.f32.mrf.mxu0 }
 0x18e   :  { %v667_v49 = vpop.f32.mrf.mxu3  ;;  %v1033_v41 = vmax.f32 %v1032_v26, %v856_v37  ;;  %v868_v42 = vmax.f32 %v718_v39, 0.0  ;;  %v767_v43 = vpop.f32.mrf.mxu1 }
 0x18f   :  { %v857_v38 = vmax.f32 %v667_v49, 0.0  ;;  %v869_v44 = vmax.f32 %v767_v43, 0.0 }
 0x190   :  { %v1882_v45 = vmax.f32 %v1059_v35, %v868_v42 }
 0x191   :  { %v1046_v56 = vmax.f32 %v1045_v34, %v857_v38  ;;  %v1884_v46 = vmax.f32 %v1072_v36, %v869_v44 }
 0x193   :  { %v620_v47 = vpop.f32.mrf.mxu2 }
 0x194   :  { %v866_v48 = vmax.f32 %v620_v47, 0.0 }
 0x195   :  { %v721_v1 = vpop.f32.mrf.mxu0 }
 0x196   :  { %v669_v32 = vpop.f32.mrf.mxu3  ;;  %v1886_v51 = vmax.f32 %v1033_v41, %v866_v48  ;;  %v770_v52 = vpop.f32.mrf.mxu1  ;;  %v878_v13 = vmax.f32 %v721_v1, 0.0 }
 0x197   :  { %v867_v50 = vmax.f32 %v669_v32, 0.0  ;;  %v879_v0 = vmax.f32 %v770_v52, 0.0 }
 0x198   :  { %v1035_v1 = vrot.slane %v1886_v51, 4 }
 0x199   :  { %v1888_v53 = vmax.f32 %v1046_v56, %v867_v50 }
 0x19b   :  { %v623_v54 = vpop.f32.mrf.mxu2 }
 0x19c   :  { %v876_v17 = vmax.f32 %v623_v54, 0.0 }
 0x19d   :  { %v723_v58 = vpop.f32.mrf.mxu0 }
 0x19e   :  { %v672_v55 = vpop.f32.mrf.mxu3  ;;  %v772_v59 = vpop.f32.mrf.mxu1  ;;  %v888_v30 = vmax.f32 %v723_v58, 0.0 }
 0x19f   :  { %v889_v31 = vmax.f32 %v772_v59, 0.0  ;;  %v877_v37 = vmax.f32 %v672_v55, 0.0  ;;  %v1048_v55 = vrot.slane %v1888_v53, 4 }
 0x1a0   :  { %v1184_v5 = vmax.f32 %v878_v13, %v888_v30 }
 0x1a1   :  { %v1197_v21 = vmax.f32 %v879_v0, %v889_v31 }
 0x1a3   :  { %v625_v60 = vpop.f32.mrf.mxu2 }
 0x1a4   :  { %v886_v23 = vmax.f32 %v625_v60, 0.0 }
 0x1a5   :  { %v726_v61 = vpop.f32.mrf.mxu0 }
 0x1a6   :  { %v674_v33 = vpop.f32.mrf.mxu3  ;;  %v775_v62 = vpop.f32.mrf.mxu1  ;;  %v898_v14 = vmax.f32 %v726_v61, 0.0  ;;  %v1158_v41 = vmax.f32 %v876_v17, %v886_v23 }
 0x1a7   :  { %v899_v15 = vmax.f32 %v775_v62, 0.0  ;;  %v887_v27 = vmax.f32 %v674_v33, 0.0 }
 0x1a8   :  { %v1185_v24 = vmax.f32 %v1184_v5, %v898_v14 }
 0x1a9   :  { %v1198_v28 = vmax.f32 %v1197_v21, %v899_v15  ;;  %v1171_v44 = vmax.f32 %v877_v37, %v887_v27  ;;  %v1036_v15 = vmax.f32 %v1886_v51, %v1035_v1 }
 0x1ab   :  { %v628_v63 = vpop.f32.mrf.mxu2 }
 0x1ac   :  { %v896_v35 = vmax.f32 %v628_v63, 0.0 }
 0x1ad   :  { %v728_v3 = vpop.f32.mrf.mxu0 }
 0x1ae   :  { %v677_v2 = vpop.f32.mrf.mxu3  ;;  %v777_v4 = vpop.f32.mrf.mxu1  ;;  %v908_v19 = vmax.f32 %v728_v3, 0.0  ;;  %v1159_v52 = vmax.f32 %v1158_v41, %v896_v35  ;;  %v1037_v35 = vrot.slane %v1036_v15, 2 }
 0x1af   :  { %v909_v22 = vmax.f32 %v777_v4, 0.0  ;;  %v897_v49 = vmax.f32 %v677_v2, 0.0 }
 0x1b0   :  { %v1186_v36 = vmax.f32 %v1185_v24, %v908_v19  ;;  %v1049_v19 = vmax.f32 %v1888_v53, %v1048_v55 }
 0x1b1   :  { %v1199_v38 = vmax.f32 %v1198_v28, %v909_v22  ;;  %v1172_v60 = vmax.f32 %v1171_v44, %v897_v49 }
 0x1b3   :  { %v630_v6 = vpop.f32.mrf.mxu2 }
 0x1b4   :  { %v906_v42 = vmax.f32 %v630_v6, 0.0 }
 0x1b5   :  { %v731_v8 = vpop.f32.mrf.mxu0 }
 0x1b6   :  { %v679_v7 = vpop.f32.mrf.mxu3  ;;  %v780_v9 = vpop.f32.mrf.mxu1  ;;  %v918_v25 = vmax.f32 %v731_v8, 0.0  ;;  %v1160_v63 = vmax.f32 %v1159_v52, %v906_v42  ;;  %v1211_v52 = vld [vmem:[%s1924_s2 + $0x8] sm:$0x3] }
 0x1b7   :  { %v919_v34 = vmax.f32 %v780_v9, 0.0  ;;  %v907_v47 = vmax.f32 %v679_v7, 0.0 }
 0x1b8   :  { %v1187_v43 = vmax.f32 %v1186_v36, %v918_v25 }
 0x1b9   :  { %v1200_v48 = vmax.f32 %v1199_v38, %v919_v34  ;;  %v1173_v7 = vmax.f32 %v1172_v60, %v907_v47 }
 0x1bb   :  { %v633_v10 = vpop.f32.mrf.mxu2 }
 0x1bc   :  { %v916_v54 = vmax.f32 %v633_v10, 0.0  ;;  %v1061_v10 = vrot.slane %v1882_v45, 4 }
 0x1bd   :  { %v733_v18 = vpop.f32.mrf.mxu0 }
 0x1be   :  { %v1890_v11 = vpop.f32.mrf.mxu3  ;;  %v782_v12 = vpop.f32.mrf.mxu1  ;;  %v928_v40 = vmax.f32 %v733_v18, 0.0 }
 0x1bf   :  { %v929_v39 = vmax.f32 %v782_v12, 0.0  ;;  %v917_v33 = vmax.f32 %v1890_v11, 0.0  ;;  %v1161_v12 = vmax.f32 %v1160_v63, %v916_v54  ;;  %v1074_v11 = vrot.slane %v1884_v46, 4 }
 0x1c0   :  { %v1188_v58 = vmax.f32 %v1187_v43, %v928_v40  ;;  %v1050_v40 = vrot.slane %v1049_v19, 2  ;;  %v1038_v43 = vmax.f32 %v1036_v15, %v1037_v35 }
 0x1c1   :  { %v1201_v61 = vmax.f32 %v1200_v48, %v929_v39  ;;  %v1174_v0 = vmax.f32 %v1173_v7, %v917_v33  ;;  %v1075_v17 = vmax.f32 %v1884_v46, %v1074_v11  ;;  %v1223_v7 = vperm.slane %v1211_v52, 1 }
 0x1c2   :  { %v1051_v47 = vmax.f32 %v1049_v19, %v1050_v40 }
 0x1c3   :  { %v635_v16 = vpop.f32.mrf.mxu2  ;;  %v1076_v42 = vrot.slane %v1075_v17, 2 }
 0x1c4   :  { %v926_v2 = vmax.f32 %v635_v16, 0.0  ;;  %v1052_v60 = vrot.slane %v1051_v47, 1 }
 0x1c5   :  { %v736_v57 = vpop.f32.mrf.mxu0  ;;  %v1077_v54 = vmax.f32 %v1075_v17, %v1076_v42 }
 0x1c6   :  { %v684_v20 = vpop.f32.mrf.mxu3  ;;  %v785_v26 = vpop.f32.mrf.mxu1  ;;  %v938_v56 = vmax.f32 %v736_v57, 0.0  ;;  %v1162_v16 = vmax.f32 %v1161_v12, %v926_v2  ;;  %v1062_v57 = vmax.f32 %v1882_v45, %v1061_v10  ;;  %v1222_v2 = vperm.slane %v1211_v52, 0 }
 0x1c7   :  { %v939_v32 = vmax.f32 %v785_v26, 0.0  ;;  %v927_v8 = vmax.f32 %v684_v20, 0.0  ;;  %v1053_v12 = vmax.f32 %v1051_v47, %v1052_v60 }
 0x1c8   :  { %v1189_v3 = vmax.f32 %v1188_v58, %v938_v56  ;;  %v1063_v49 = vrot.slane %v1062_v57, 2  ;;  %v1039_v58 = vrot.slane %v1038_v43, 1 }
 0x1c9   :  { %v1202_v9 = vmax.f32 %v1201_v61, %v939_v32  ;;  %v1175_v21 = vmax.f32 %v1174_v0, %v927_v8  ;;  %v1078_v8 = vrot.slane %v1077_v54, 1 }
 0x1ca   :  { %v1064_v32 = vmax.f32 %v1062_v57, %v1063_v49 }
 0x1cb   :  { %v638_v50 = vpop.f32.mrf.mxu2 }
 0x1cc   :  { %v936_v13 = vmax.f32 %v638_v50, 0.0  ;;  %v1065_v61 = vrot.slane %v1064_v32, 1 }
 0x1cd   :  { %v738_v62 = vpop.f32.mrf.mxu0 }
 0x1ce   :  { %v687_v59 = vpop.f32.mrf.mxu3  ;;  %v948_v4 = vmax.f32 %v738_v62, 0.0  ;;  %v787_v6 = vpop.f32.mrf.mxu1  ;;  %v1163_v23 = vmax.f32 %v1162_v16, %v936_v13  ;;  %v1066_v0 = vmax.f32 %v1064_v32, %v1065_v61 }
 0x1cf   :  { %v949_v18 = vmax.f32 %v787_v6, 0.0  ;;  %v937_v31 = vmax.f32 %v687_v59, 0.0 }
 0x1d0   :  { %v1190_v30 = vmax.f32 %v1189_v3, %v948_v4  ;;  %v1566_v3 = vld [vmem:[%s1924_s2] sm:$0xff] }
 0x1d1   :  { %v1203_v14 = vmax.f32 %v1202_v9, %v949_v18  ;;  %v1176_v27 = vmax.f32 %v1175_v21, %v937_v31  ;;  %v1220_v4 = vperm.slane %v1566_v3, 6  ;;  %v1040_v9 = vmax.f32 %v1038_v43, %v1039_v58 }
 0x1d2   :  { %v1191_v5 = vrot.slane %v1190_v30, 4 }
 0x1d3   :  { %v1204_v20 = vrot.slane %v1203_v14, 4  ;;  %v640_v22 = vpop.f32.mrf.mxu2  ;;  %v1240_v15 = vmul.f32 %v1220_v4, %v1040_v9 }
 0x1d4   :  { %v1192_v24 = vmax.f32 %v1190_v30, %v1191_v5  ;;  %v946_v25 = vmax.f32 %v640_v22, 0.0  ;;  %v1221_v30 = vperm.slane %v1566_v3, 7  ;;  %v1079_v5 = vmax.f32 %v1077_v54, %v1078_v8 }
 0x1d5   :  { %v1205_v28 = vmax.f32 %v1203_v14, %v1204_v20  ;;  %v1242_v22 = vmul.f32 %v1222_v2, %v1066_v0 }
 0x1d6   :  { %v689_v26 = vpop.f32.mrf.mxu3  ;;  %v1193_v51 = vrot.slane %v1192_v24, 2  ;;  %v1164_v36 = vmax.f32 %v1163_v23, %v946_v25  ;;  %v1241_v20 = vmul.f32 %v1221_v30, %v1053_v12 }
 0x1d7   :  { %v947_v34 = vmax.f32 %v689_v26, 0.0  ;;  %v1206_v37 = vrot.slane %v1205_v28, 2  ;;  %v1243_v26 = vmul.f32 %v1223_v7, %v1079_v5 }
 0x1d8   :  { %v1194_v38 = vmax.f32 %v1192_v24, %v1193_v51  ;;  %v1165_v39 = vrot.slane %v1164_v36, 4 }
 0x1d9   :  { %v1177_v53 = vmax.f32 %v1176_v27, %v947_v34  ;;  %v1207_v41 = vmax.f32 %v1205_v28, %v1206_v37 }
 0x1da   :  { %v1195_v56 = vrot.slane %v1194_v38, 1  ;;  %v1166_v44 = vmax.f32 %v1164_v36, %v1165_v39 }
 0x1db   :  { %v1178_v45 = vrot.slane %v1177_v53, 4  ;;  %v1208_v50 = vrot.slane %v1207_v41, 1 }
 0x1dc   :  { %v1167_v46 = vrot.slane %v1166_v44, 2  ;;  %v1196_v59 = vmax.f32 %v1194_v38, %v1195_v56 }
 0x1dd   :  { %v1179_v48 = vmax.f32 %v1177_v53, %v1178_v45  ;;  %v1209_v62 = vmax.f32 %v1207_v41, %v1208_v50  ;;  %v1327_v53 = vstv %s1925_s3 }
 0x1de   :  { %v1168_v55 = vmax.f32 %v1166_v44, %v1167_v46  ;;  %v1252_v10 = vmul.f32 %v1222_v2, %v1196_v59 }
 0x1df   :  { %v1180_v1 = vrot.slane %v1179_v48, 2  ;;  %v1253_v14 = vmul.f32 %v1223_v7, %v1209_v62 }
 0x1e0   :  { %v1169_v63 = vrot.slane %v1168_v55, 1  ;;  %v1291_v19 = vrot.slane %v1252_v10, 7 }
 0x1e1   :  { %v1181_v33 = vmax.f32 %v1179_v48, %v1180_v1  ;;  %v1293_v23 = vrot.slane %v1253_v14, 7 }
 0x1e2   :  { %v1170_v18 = vmax.f32 %v1168_v55, %v1169_v63  ;;  %v1292_v27 = vsel %vm1275_vm3, %v1291_v19, %v1242_v22 }
 0x1e3   :  { %v1182_v6 = vrot.slane %v1181_v33, 1  ;;  %v1294_v17 = vsel %vm1275_vm3, %v1293_v23, %v1243_v26  ;;  %v1320_v51 = vsel %vm267_vm1, %v1292_v27, 0.0 }
 0x1e4   :  { %v1250_v31 = vmul.f32 %v1220_v4, %v1170_v18  ;;  %v1322_v40 = vsel %vm267_vm1, %v1294_v17, 0.0 }
 0x1e5   :  { %v1183_v13 = vmax.f32 %v1181_v33, %v1182_v6 }
 0x1e6   :  { %v1287_v16 = vrot.slane %v1250_v31, 7 }
 0x1e7   :  { %v1251_v11 = vmul.f32 %v1221_v30, %v1183_v13 }
 0x1e8   :  { %v1288_v57 = vsel %vm1275_vm3, %v1287_v16, %v1240_v15 }
 0x1e9   :  { %v1289_v21 = vrot.slane %v1251_v11, 7  ;;  %v1316_v25 = vsel %vm267_vm1, %v1288_v57, 0.0 }
 0x1ea   :  { %v1317_v28 = vadd.f32 %v1316_v25, %v1880_v29 }
 0x1eb   :  { %v1290_v24 = vsel %vm1275_vm3, %v1289_v21, %v1241_v20 }
 0x1ec   :  { %v1318_v34 = vsel %vm267_vm1, %v1290_v24, 0.0 }
 0x1ed   :  { %v1319_v35 = vadd.f32 %v1318_v34, %v1317_v28 }
 0x1ef   :  { %v1321_v36 = vadd.f32 %v1320_v51, %v1319_v35 }
 0x1f1   :  { %v1323_v37 = vadd.f32 %v1322_v40, %v1321_v36 }
 0x1f3   :  { %1324 = vadd.xlane.f32.xlu0 %v1323_v37 }
 0x266   :  { %v1325_v49 = vpop.xlane.xlu0 %1324 }
 0x267   :  { %v1328_v38 = vadd.f32 %v1327_v53, %v1325_v49 }
 0x269   :  { %1330 = vst.msk [vmem:[%s1926_s4] sm:$0x3] %vm1329_vm4, %v1328_v38 }
 0x26a   :  { %1335 = vsyncpa [#allocation4], 1 }

</bundles_post_ra>
